<compile_context>
chip_gen: v5e
topology: v5e:2x2
jax: 0.10.0
libtpu: 0.0.40
codegen_flags: <defaults>
</compile_context>

<pallas_src>
import jax
import jax.numpy as jnp
from jax import lax
from jax.experimental import pallas as pl
from jax.experimental.pallas import tpu as pltpu

FEATURE_DIM = 4
FP = 8                      # feature dim padded to a sublane multiple
HIDDEN_DIM = 32
EMBEDDING_DIM = 32          # == HIDDEN_DIM (required by the module's pooled_dim bookkeeping)
NUM_CONVS = 2
DROPOUT_RATE = 0.0          # Dropout(p=0) == identity
BN_EPS = 1e-5
NEG_SLOPE = 0.2             # PyG GATConv default negative_slope

GRAPH_SIZES = [5, 3]        # B=2 graphs flattened into one big graph
NB = len(GRAPH_SIZES)       # number of graphs
N = sum(GRAPH_SIZES)        # total nodes (= 8)

# ---- node-slab column layout: [x (padded to 8) | adj | assign one-hot | per-graph t] ----
C_X, C_ADJ, C_ASG, C_T = 0, FP, FP + N, FP + N + NB
NODE_COLS = FP + N + NB + 1

# ---- 32-wide weight/vector slab row layout (matrix offsets are multiples of 8) ----------
POOLED_P = FP + 3 * HIDDEN_DIM          # padded JumpingKnowledge width (104)
O_PW1 = 0                               # preprocess Linear1 [FP, 32] (rows 4:8 zero)
O_PW2 = O_PW1 + FP                      # preprocess Linear2 [32, 32]
O_C0W = O_PW2 + HIDDEN_DIM              # GATConv0 weight   [32, 32]
O_C1W = O_C0W + HIDDEN_DIM              # GATConv1 weight   [32, 32]
O_FW1 = O_C1W + HIDDEN_DIM              # final Linear1 (JK 'cat', padded) [104, 32]
O_FW2 = O_FW1 + POOLED_P                # final Linear2     [32, 32]
O_VEC = O_FW2 + HIDDEN_DIM              # 14 x [1, 32] bias/gamma/beta/att rows
(V_PB1, V_PG, V_PBE, V_PB2,
 V_C0AS, V_C0AD, V_C0B,
 V_C1AS, V_C1AD, V_C1B,
 V_FB1, V_FG, V_FBE, V_FB2) = range(14)
W_ROWS = ((O_VEC + 14 + 7) // 8) * 8    # 256

# ---- 64-wide fused time-MLP slab (tm0 | tm1 stacked along lanes) ------------------------
T_W1, T_B1, T_G, T_BE, T_B2 = 0, 1, 2, 3, 4
T_W2 = 8                                # block-diagonal second layer [64, 64]
T_ROWS = T_W2 + 2 * HIDDEN_DIM          # 72


def _bn_relu(h, gamma, beta):
    """BatchNorm1d (training-mode batch stats) + ReLU."""
    mu = jnp.mean(h, axis=0, keepdims=True)
    var = jnp.mean((h - mu) * (h - mu), axis=0, keepdims=True)
    return jnp.maximum((h - mu) * lax.rsqrt(var + BN_EPS) * gamma + beta, 0.0)


# ---------------- Pallas kernel ----------------------------------------------------------
def node_embedder_kernel(node_ref, w_ref, t_ref, out_ref):
    nd = node_ref[...]                                  # one [N, 19] load
    x_pad = nd[:, C_X:C_X + FP]                         # [N, 8] (cols 4:8 zero)
    adj = nd[:, C_ADJ:C_ADJ + N]                        # [N, N] 0/1 (+ self loops)
    assign = nd[:, C_ASG:C_ASG + NB]                    # [N, NB] one-hot graph id
    tcol = nd[0:NB, C_T:C_T + 1]                        # [NB, 1] diffusion time

    def vec(i):                                         # static slice: [1, 32] row vector
        return w_ref[O_VEC + i:O_VEC + i + 1, :]

    # ---- preprocess MLP: Linear -> BN -> ReLU -> Linear --------------------------------
    h = jnp.dot(x_pad, w_ref[O_PW1:O_PW1 + FP, :],
                preferred_element_type=jnp.float32) + vec(V_PB1)
    h = _bn_relu(h, vec(V_PG), vec(V_PBE))
    h_pre = jnp.dot(h, w_ref[O_PW2:O_PW2 + HIDDEN_DIM, :],
                    preferred_element_type=jnp.float32) + vec(V_PB2)

    # ---- fused time MLPs: both convs' time embeddings in one width-64 MLP --------------
    ht = tcol * t_ref[T_W1:T_W1 + 1, :] + t_ref[T_B1:T_B1 + 1, :]        # [NB, 64]
    ht = _bn_relu(ht, t_ref[T_G:T_G + 1, :], t_ref[T_BE:T_BE + 1, :])
    te = jnp.dot(ht, t_ref[T_W2:T_W2 + 2 * HIDDEN_DIM, :],
                 preferred_element_type=jnp.float32) + t_ref[T_B2:T_B2 + 1, :]
    # repeat_interleave(time_emb, graph_sizes) == assign @ time_emb (both convs at once)
    te_nodes = jnp.dot(assign, te, preferred_element_type=jnp.float32)   # [N, 64]

    # ---- dense single-head GATConv (PyG semantics; self-loops already in adj) ----------
    def gat(hin, o_w, i_as, i_ad, i_b):
        xp = jnp.dot(hin, w_ref[o_w:o_w + HIDDEN_DIM, :],
                     preferred_element_type=jnp.float32)                 # [N, 32]
        a_dst = jnp.sum(xp * vec(i_ad), axis=1, keepdims=True)           # [N, 1]
        a_src = jnp.sum(xp * vec(i_as), axis=1, keepdims=True)           # [N, 1]
        # single-vreg transpose of the per-source column (no xp.T, no 1-row MXU matmul)
        e = a_dst + jnp.transpose(a_src, (1, 0))                         # e[dst, src]
        e = jnp.where(e > 0, e, NEG_SLOPE * e)                           # LeakyReLU(0.2)
        e = jnp.where(adj > 0, e, jnp.full_like(e, -1e30))               # mask non-edges
        e = e - jnp.max(e, axis=1, keepdims=True)
        p = jnp.exp(e)
        p = p / jnp.sum(p, axis=1, keepdims=True)                        # softmax over src
        return jnp.dot(p, xp, preferred_element_type=jnp.float32) + vec(i_b)

    h0 = gat(h_pre, O_C0W, V_C0AS, V_C0AD, V_C0B) + te_nodes[:, :HIDDEN_DIM]
    h1 = gat(h0, O_C1W, V_C1AS, V_C1AD, V_C1B) + te_nodes[:, HIDDEN_DIM:]

    # ---- JumpingKnowledge('cat') + final MLP: one K=104 matmul -------------------------
    z = jnp.concatenate([x_pad, h_pre, h0, h1], axis=-1)                 # [N, 104]
    z = jnp.dot(z, w_ref[O_FW1:O_FW1 + POOLED_P, :],
                preferred_element_type=jnp.float32) + vec(V_FB1)
    z = _bn_relu(z, vec(V_FG), vec(V_FBE))
    # Dropout(p=0.0) is the identity.
    # TODO(synk): nonzero dropout would require pltpu.prng_seed/prng_random_bits in-kernel.
    out_ref[...] = jnp.dot(z, w_ref[O_FW2:O_FW2 + HIDDEN_DIM, :],
                           preferred_element_type=jnp.float32) + vec(V_FB2)


def node_embedder_pallas(node_slab, w_slab, t_slab):
    # 3 HBM->VMEM DMAs total (was ~39 separate inputs); gridless — everything fits in VMEM.
    # TODO(synk): at large N, row-tile attention (grid over dst blocks, adj as int8,
    # 'parallel' axis for v7x's 2nd TensorCore, vmem_limit_bytes for its 64 MiB VMEM);
    # BatchNorm batch stats would then need a two-pass scheme to stay global.
    return pl.pallas_call(
        node_embedder_kernel,
        out_shape=jax.ShapeDtypeStruct((N, EMBEDDING_DIM), jnp.float32),
        in_specs=[pl.BlockSpec(memory_space=pltpu.MemorySpace.VMEM)] * 3,
        out_specs=pl.BlockSpec(memory_space=pltpu.MemorySpace.VMEM),
    )(node_slab, w_slab, t_slab)


# ---------------- pure-JAX reference (original, UN-fused module math) --------------------
def _mlp2_ref(x, W1, b1, g, be, W2, b2):
    h = x * W1 + b1 if W1.shape[0] == 1 else jnp.dot(x, W1) + b1
    mu = jnp.mean(h, axis=0, keepdims=True)
    var = jnp.mean((h - mu) ** 2, axis=0, keepdims=True)
    h = jnp.maximum((h - mu) / jnp.sqrt(var + BN_EPS) * g + be, 0.0)
    return jnp.dot(h, W2) + b2


def _gat_ref(h, adj, W, a_src, a_dst, b):
    xp = jnp.dot(h, W)
    e = jnp.sum(xp * a_dst, axis=1, keepdims=True) + jnp.dot(a_src, xp.T)
    e = jnp.where(e > 0, e, NEG_SLOPE * e)
    e = jnp.where(adj > 0, e, -1e30)
    e = e - jnp.max(e, axis=1, keepdims=True)
    p = jnp.exp(e)
    p = p / jnp.sum(p, axis=1, keepdims=True)
    return jnp.dot(p, xp) + b


def forward_ref(x, adj, assign, tcol, rp):
    h_pre = _mlp2_ref(x, *rp["pre"])
    jump = [x, h_pre]
    h = h_pre
    for c in range(NUM_CONVS):
        h = _gat_ref(h, adj, *rp["conv"][c])
        te = _mlp2_ref(tcol, *rp["time"][c])
        h = h + jnp.dot(assign, te)                   # repeat_interleave over graph sizes
        jump.append(h)
    z = jnp.concatenate(jump, axis=-1)                # JumpingKnowledge('cat'), width 100
    fW1, fb1, fg, fbe, fW2, fb2 = rp["final"]
    z = jnp.dot(z, fW1) + fb1
    mu = jnp.mean(z, axis=0, keepdims=True)
    var = jnp.mean((z - mu) ** 2, axis=0, keepdims=True)
    z = jnp.maximum((z - mu) / jnp.sqrt(var + BN_EPS) * fg + fbe, 0.0)
    return jnp.dot(z, fW2) + fb2


# ---------------- deterministic setup + run ----------------------------------------------
if __name__ == "__main__":
    key = jax.random.PRNGKey(0)
    keys = iter(jax.random.split(key, 64))

    def nrm(shape, scale=0.2):
        return (scale * jax.random.normal(next(keys), shape)).astype(jnp.float32)

    def mlp_params(din, dout):
        return (nrm((din, HIDDEN_DIM)), nrm((1, HIDDEN_DIM), 0.05),
                jnp.ones((1, HIDDEN_DIM), jnp.float32) + nrm((1, HIDDEN_DIM), 0.05),
                nrm((1, HIDDEN_DIM), 0.05),
                nrm((HIDDEN_DIM, dout)), nrm((1, dout), 0.05))

    def gat_params(din, dout):
        return (nrm((din, dout)), nrm((1, dout)), nrm((1, dout)), nrm((1, dout), 0.05))

    pooled_dim = FEATURE_DIM + 3 * HIDDEN_DIM         # 100
    rp = {
        "pre": mlp_params(FEATURE_DIM, EMBEDDING_DIM),
        "conv": [gat_params(HIDDEN_DIM, HIDDEN_DIM),
                 gat_params(HIDDEN_DIM, EMBEDDING_DIM)],
        "time": [mlp_params(1, HIDDEN_DIM), mlp_params(1, EMBEDDING_DIM)],
        "final": (nrm((pooled_dim, HIDDEN_DIM)), nrm((1, HIDDEN_DIM), 0.05),
                  jnp.ones((1, HIDDEN_DIM), jnp.float32) + nrm((1, HIDDEN_DIM), 0.05),
                  nrm((1, HIDDEN_DIM), 0.05),
                  nrm((HIDDEN_DIM, EMBEDDING_DIM)), nrm((1, EMBEDDING_DIM), 0.05)),
    }

    # inputs: node features, ring-graph edges per graph, diffusion time per graph
    x = (0.5 * jax.random.normal(next(keys), (N, FEATURE_DIM))).astype(jnp.float32)

    edges, off = [], 0
    for gs in GRAPH_SIZES:
        for k in range(gs):
            u, v = off + k, off + (k + 1) % gs
            edges.append((u, v)); edges.append((v, u))
        off += gs
    src = jnp.array([e[0] for e in edges], jnp.int32)
    dst = jnp.array([e[1] for e in edges], jnp.int32)
    adj = jnp.zeros((N, N), jnp.float32).at[dst, src].set(1.0)
    adj = adj.at[jnp.arange(N), jnp.arange(N)].set(1.0)      # add_self_loops=True
    # TODO(synk): at scale, ship adj as int8 (only compared to 0, never matmul'd).

    graph_id = sum(([g] * gs for g, gs in enumerate(GRAPH_SIZES)), [])
    assign = jax.nn.one_hot(jnp.array(graph_id), NB, dtype=jnp.float32)   # [N, NB]

    t = jnp.array([0.25, 0.75], jnp.float32)
    tcol = t[:, None]                                        # t[:, None].float()

    # --- pack the 3 slabs --------------------------------------------------------------
    node_slab = jnp.zeros((N, NODE_COLS), jnp.float32)
    node_slab = node_slab.at[:, C_X:C_X + FEATURE_DIM].set(x)
    node_slab = node_slab.at[:, C_ADJ:C_ADJ + N].set(adj)
    node_slab = node_slab.at[:, C_ASG:C_ASG + NB].set(assign)
    node_slab = node_slab.at[0:NB, C_T].set(t)

    pW1, pb1, pg, pbe, pW2, pb2 = rp["pre"]
    (c0W, c0as, c0ad, c0b), (c1W, c1as, c1ad, c1b) = rp["conv"]
    fW1, fb1, fg, fbe, fW2, fb2 = rp["final"]

    w_slab = jnp.zeros((W_ROWS, HIDDEN_DIM), jnp.float32)
    w_slab = w_slab.at[O_PW1:O_PW1 + FEATURE_DIM].set(pW1)            # rows 4:8 stay zero
    w_slab = w_slab.at[O_PW2:O_PW2 + HIDDEN_DIM].set(pW2)
    w_slab = w_slab.at[O_C0W:O_C0W + HIDDEN_DIM].set(c0W)
    w_slab = w_slab.at[O_C1W:O_C1W + HIDDEN_DIM].set(c1W)
    # JK 'cat' weight with zero rows inserted where x was padded 4 -> 8
    w_slab = w_slab.at[O_FW1:O_FW1 + FEATURE_DIM].set(fW1[:FEATURE_DIM])
    w_slab = w_slab.at[O_FW1 + FP:O_FW1 + POOLED_P].set(fW1[FEATURE_DIM:])
    w_slab = w_slab.at[O_FW2:O_FW2 + HIDDEN_DIM].set(fW2)
    vecs = jnp.concatenate([pb1, pg, pbe, pb2, c0as, c0ad, c0b,
                            c1as, c1ad, c1b, fb1, fg, fbe, fb2], axis=0)
    w_slab = w_slab.at[O_VEC:O_VEC + 14].set(vecs)

    (t0W1, t0b1, t0g, t0be, t0W2, t0b2), (t1W1, t1b1, t1g, t1be, t1W2, t1b2) = rp["time"]
    t_slab = jnp.zeros((T_ROWS, 2 * HIDDEN_DIM), jnp.float32)
    t_slab = t_slab.at[T_W1].set(jnp.concatenate([t0W1, t1W1], axis=1)[0])
    t_slab = t_slab.at[T_B1].set(jnp.concatenate([t0b1, t1b1], axis=1)[0])
    t_slab = t_slab.at[T_G].set(jnp.concatenate([t0g, t1g], axis=1)[0])
    t_slab = t_slab.at[T_BE].set(jnp.concatenate([t0be, t1be], axis=1)[0])
    t_slab = t_slab.at[T_B2].set(jnp.concatenate([t0b2, t1b2], axis=1)[0])
    t_slab = t_slab.at[T_W2:T_W2 + HIDDEN_DIM, :HIDDEN_DIM].set(t0W2)          # block-diag
    t_slab = t_slab.at[T_W2 + HIDDEN_DIM:T_W2 + 2 * HIDDEN_DIM, HIDDEN_DIM:].set(t1W2)

    # --- run Pallas kernel and compare against the un-fused reference -------------------
    out = jax.block_until_ready(node_embedder_pallas(node_slab, w_slab, t_slab))
    ref = jax.block_until_ready(forward_ref(x, adj, assign, tcol, rp))

    assert out.shape == (N, EMBEDDING_DIM) and out.dtype == jnp.float32
    max_err = float(jnp.max(jnp.abs(out - ref)))
    if max_err > 1e-3:
        raise AssertionError(f"Pallas kernel mismatch vs reference, max_err={max_err}")

    print("KERNEL_OK")
</pallas_src>

<mosaic_0001>
module attributes {stable_mosaic.version = 11 : i64} {
  func.func @node_embedder_kernel(%arg0: memref<8x19xf32, #tpu.memory_space<vmem>>, %arg1: memref<256x32xf32, #tpu.memory_space<vmem>>, %arg2: memref<72x64xf32, #tpu.memory_space<vmem>>, %arg3: memref<8x32xf32, #tpu.memory_space<vmem>>) attributes {dimension_semantics = [], scalar_prefetch = 0 : i64, scratch_operands = 0 : i64, tpu.core_type = #tpu.core_type<tc>} {
    %c0 = arith.constant 0 : index
    %c0_0 = arith.constant 0 : index
    %0 = vector.load %arg0[%c0, %c0_0] : memref<8x19xf32, #tpu.memory_space<vmem>>, vector<8x19xf32>
    %1 = vector.extract_strided_slice %0 {offsets = [0, 0], sizes = [8, 8], strides = [1, 1]} : vector<8x19xf32> to vector<8x8xf32>
    %2 = vector.extract_strided_slice %0 {offsets = [0, 8], sizes = [8, 8], strides = [1, 1]} : vector<8x19xf32> to vector<8x8xf32>
    %3 = vector.extract_strided_slice %0 {offsets = [0, 16], sizes = [8, 2], strides = [1, 1]} : vector<8x19xf32> to vector<8x2xf32>
    %4 = vector.extract_strided_slice %0 {offsets = [0, 18], sizes = [2, 1], strides = [1, 1]} : vector<8x19xf32> to vector<2x1xf32>
    %c0_1 = arith.constant 0 : index
    %c0_2 = arith.constant 0 : index
    %5 = vector.load %arg1[%c0_1, %c0_2] : memref<256x32xf32, #tpu.memory_space<vmem>>, vector<8x32xf32>
    %cst = arith.constant dense<0.000000e+00> : vector<8x32xf32>
    %6 = tpu.matmul %1, %5, %cst {dimension_numbers = #tpu.dot_dimension_numbers<[1], [0], [0], [1], [0, 0, 1, 1], [], []>} : vector<8x8xf32>, vector<8x32xf32>, vector<8x32xf32> -> vector<8x32xf32>
    %c240 = arith.constant 240 : index
    %c0_3 = arith.constant 0 : index
    %7 = vector.load %arg1[%c240, %c0_3] : memref<256x32xf32, #tpu.memory_space<vmem>>, vector<1x32xf32>
    %8 = vector.broadcast %7 : vector<1x32xf32> to vector<8x32xf32>
    %9 = arith.addf %6, %8 : vector<8x32xf32>
    %c241 = arith.constant 241 : index
    %c0_4 = arith.constant 0 : index
    %10 = vector.load %arg1[%c241, %c0_4] : memref<256x32xf32, #tpu.memory_space<vmem>>, vector<1x32xf32>
    %c242 = arith.constant 242 : index
    %c0_5 = arith.constant 0 : index
    %11 = vector.load %arg1[%c242, %c0_5] : memref<256x32xf32, #tpu.memory_space<vmem>>, vector<1x32xf32>
    %cst_6 = arith.constant dense<0.000000e+00> : vector<32xf32>
    %12 = vector.multi_reduction <add>, %9, %cst_6 [0] : vector<8x32xf32> to vector<32xf32>
    %13 = vector.shape_cast %12 : vector<32xf32> to vector<1x32xf32>
    %cst_7 = arith.constant 8.000000e+00 : f32
    %14 = vector.broadcast %cst_7 : f32 to vector<1x32xf32>
    %15 = arith.divf %13, %14 : vector<1x32xf32>
    %16 = vector.broadcast %15 : vector<1x32xf32> to vector<8x32xf32>
    %17 = arith.subf %9, %16 : vector<8x32xf32>
    %18 = vector.broadcast %15 : vector<1x32xf32> to vector<8x32xf32>
    %19 = arith.subf %9, %18 : vector<8x32xf32>
    %20 = arith.mulf %17, %19 : vector<8x32xf32>
    %cst_8 = arith.constant dense<0.000000e+00> : vector<32xf32>
    %21 = vector.multi_reduction <add>, %20, %cst_8 [0] : vector<8x32xf32> to vector<32xf32>
    %22 = vector.shape_cast %21 : vector<32xf32> to vector<1x32xf32>
    %cst_9 = arith.constant 8.000000e+00 : f32
    %23 = vector.broadcast %cst_9 : f32 to vector<1x32xf32>
    %24 = arith.divf %22, %23 : vector<1x32xf32>
    %25 = vector.broadcast %15 : vector<1x32xf32> to vector<8x32xf32>
    %26 = arith.subf %9, %25 : vector<8x32xf32>
    %cst_10 = arith.constant 9.99999974E-6 : f32
    %27 = vector.broadcast %cst_10 : f32 to vector<1x32xf32>
    %28 = arith.addf %24, %27 : vector<1x32xf32>
    %29 = math.rsqrt %28 : vector<1x32xf32>
    %30 = vector.broadcast %29 : vector<1x32xf32> to vector<8x32xf32>
    %31 = arith.mulf %26, %30 : vector<8x32xf32>
    %32 = vector.broadcast %10 : vector<1x32xf32> to vector<8x32xf32>
    %33 = arith.mulf %31, %32 : vector<8x32xf32>
    %34 = vector.broadcast %11 : vector<1x32xf32> to vector<8x32xf32>
    %35 = arith.addf %33, %34 : vector<8x32xf32>
    %cst_11 = arith.constant 0.000000e+00 : f32
    %36 = vector.broadcast %cst_11 : f32 to vector<8x32xf32>
    %37 = arith.maximumf %35, %36 : vector<8x32xf32>
    %c8 = arith.constant 8 : index
    %c0_12 = arith.constant 0 : index
    %38 = vector.load %arg1[%c8, %c0_12] : memref<256x32xf32, #tpu.memory_space<vmem>>, vector<32x32xf32>
    %cst_13 = arith.constant dense<0.000000e+00> : vector<8x32xf32>
    %39 = tpu.matmul %37, %38, %cst_13 {dimension_numbers = #tpu.dot_dimension_numbers<[1], [0], [0], [1], [0, 0, 1, 1], [], []>} : vector<8x32xf32>, vector<32x32xf32>, vector<8x32xf32> -> vector<8x32xf32>
    %c243 = arith.constant 243 : index
    %c0_14 = arith.constant 0 : index
    %40 = vector.load %arg1[%c243, %c0_14] : memref<256x32xf32, #tpu.memory_space<vmem>>, vector<1x32xf32>
    %41 = vector.broadcast %40 : vector<1x32xf32> to vector<8x32xf32>
    %42 = arith.addf %39, %41 : vector<8x32xf32>
    %c0_15 = arith.constant 0 : index
    %c0_16 = arith.constant 0 : index
    %43 = vector.load %arg2[%c0_15, %c0_16] : memref<72x64xf32, #tpu.memory_space<vmem>>, vector<1x64xf32>
    %44 = vector.broadcast %4 : vector<2x1xf32> to vector<2x64xf32>
    %45 = vector.broadcast %43 : vector<1x64xf32> to vector<2x64xf32>
    %46 = arith.mulf %44, %45 : vector<2x64xf32>
    %c1 = arith.constant 1 : index
    %c0_17 = arith.constant 0 : index
    %47 = vector.load %arg2[%c1, %c0_17] : memref<72x64xf32, #tpu.memory_space<vmem>>, vector<1x64xf32>
    %48 = vector.broadcast %47 : vector<1x64xf32> to vector<2x64xf32>
    %49 = arith.addf %46, %48 : vector<2x64xf32>
    %c2 = arith.constant 2 : index
    %c0_18 = arith.constant 0 : index
    %50 = vector.load %arg2[%c2, %c0_18] : memref<72x64xf32, #tpu.memory_space<vmem>>, vector<1x64xf32>
    %c3 = arith.constant 3 : index
    %c0_19 = arith.constant 0 : index
    %51 = vector.load %arg2[%c3, %c0_19] : memref<72x64xf32, #tpu.memory_space<vmem>>, vector<1x64xf32>
    %cst_20 = arith.constant dense<0.000000e+00> : vector<64xf32>
    %52 = vector.multi_reduction <add>, %49, %cst_20 [0] : vector<2x64xf32> to vector<64xf32>
    %53 = vector.shape_cast %52 : vector<64xf32> to vector<1x64xf32>
    %cst_21 = arith.constant 2.000000e+00 : f32
    %54 = vector.broadcast %cst_21 : f32 to vector<1x64xf32>
    %55 = arith.divf %53, %54 : vector<1x64xf32>
    %56 = vector.broadcast %55 : vector<1x64xf32> to vector<2x64xf32>
    %57 = arith.subf %49, %56 : vector<2x64xf32>
    %58 = vector.broadcast %55 : vector<1x64xf32> to vector<2x64xf32>
    %59 = arith.subf %49, %58 : vector<2x64xf32>
    %60 = arith.mulf %57, %59 : vector<2x64xf32>
    %cst_22 = arith.constant dense<0.000000e+00> : vector<64xf32>
    %61 = vector.multi_reduction <add>, %60, %cst_22 [0] : vector<2x64xf32> to vector<64xf32>
    %62 = vector.shape_cast %61 : vector<64xf32> to vector<1x64xf32>
    %cst_23 = arith.constant 2.000000e+00 : f32
    %63 = vector.broadcast %cst_23 : f32 to vector<1x64xf32>
    %64 = arith.divf %62, %63 : vector<1x64xf32>
    %65 = vector.broadcast %55 : vector<1x64xf32> to vector<2x64xf32>
    %66 = arith.subf %49, %65 : vector<2x64xf32>
    %cst_24 = arith.constant 9.99999974E-6 : f32
    %67 = vector.broadcast %cst_24 : f32 to vector<1x64xf32>
    %68 = arith.addf %64, %67 : vector<1x64xf32>
    %69 = math.rsqrt %68 : vector<1x64xf32>
    %70 = vector.broadcast %69 : vector<1x64xf32> to vector<2x64xf32>
    %71 = arith.mulf %66, %70 : vector<2x64xf32>
    %72 = vector.broadcast %50 : vector<1x64xf32> to vector<2x64xf32>
    %73 = arith.mulf %71, %72 : vector<2x64xf32>
    %74 = vector.broadcast %51 : vector<1x64xf32> to vector<2x64xf32>
    %75 = arith.addf %73, %74 : vector<2x64xf32>
    %cst_25 = arith.constant 0.000000e+00 : f32
    %76 = vector.broadcast %cst_25 : f32 to vector<2x64xf32>
    %77 = arith.maximumf %75, %76 : vector<2x64xf32>
    %c8_26 = arith.constant 8 : index
    %c0_27 = arith.constant 0 : index
    %78 = vector.load %arg2[%c8_26, %c0_27] : memref<72x64xf32, #tpu.memory_space<vmem>>, vector<64x64xf32>
    %cst_28 = arith.constant dense<0.000000e+00> : vector<2x64xf32>
    %79 = tpu.matmul %77, %78, %cst_28 {dimension_numbers = #tpu.dot_dimension_numbers<[1], [0], [0], [1], [0, 0, 1, 1], [], []>} : vector<2x64xf32>, vector<64x64xf32>, vector<2x64xf32> -> vector<2x64xf32>
    %c4 = arith.constant 4 : index
    %c0_29 = arith.constant 0 : index
    %80 = vector.load %arg2[%c4, %c0_29] : memref<72x64xf32, #tpu.memory_space<vmem>>, vector<1x64xf32>
    %81 = vector.broadcast %80 : vector<1x64xf32> to vector<2x64xf32>
    %82 = arith.addf %79, %81 : vector<2x64xf32>
    %cst_30 = arith.constant dense<0.000000e+00> : vector<8x64xf32>
    %83 = tpu.matmul %3, %82, %cst_30 {dimension_numbers = #tpu.dot_dimension_numbers<[1], [0], [0], [1], [0, 0, 1, 1], [], []>} : vector<8x2xf32>, vector<2x64xf32>, vector<8x64xf32> -> vector<8x64xf32>
    %c40 = arith.constant 40 : index
    %c0_31 = arith.constant 0 : index
    %84 = vector.load %arg1[%c40, %c0_31] : memref<256x32xf32, #tpu.memory_space<vmem>>, vector<32x32xf32>
    %cst_32 = arith.constant dense<0.000000e+00> : vector<8x32xf32>
    %85 = tpu.matmul %42, %84, %cst_32 {dimension_numbers = #tpu.dot_dimension_numbers<[1], [0], [0], [1], [0, 0, 1, 1], [], []>} : vector<8x32xf32>, vector<32x32xf32>, vector<8x32xf32> -> vector<8x32xf32>
    %c245 = arith.constant 245 : index
    %c0_33 = arith.constant 0 : index
    %86 = vector.load %arg1[%c245, %c0_33] : memref<256x32xf32, #tpu.memory_space<vmem>>, vector<1x32xf32>
    %87 = vector.broadcast %86 : vector<1x32xf32> to vector<8x32xf32>
    %88 = arith.mulf %85, %87 : vector<8x32xf32>
    %cst_34 = arith.constant dense<0.000000e+00> : vector<8xf32>
    %89 = vector.multi_reduction <add>, %88, %cst_34 [1] : vector<8x32xf32> to vector<8xf32>
    %90 = vector.shape_cast %89 : vector<8xf32> to vector<8x1xf32>
    %c244 = arith.constant 244 : index
    %c0_35 = arith.constant 0 : index
    %91 = vector.load %arg1[%c244, %c0_35] : memref<256x32xf32, #tpu.memory_space<vmem>>, vector<1x32xf32>
    %92 = vector.broadcast %91 : vector<1x32xf32> to vector<8x32xf32>
    %93 = arith.mulf %85, %92 : vector<8x32xf32>
    %cst_36 = arith.constant dense<0.000000e+00> : vector<8xf32>
    %94 = vector.multi_reduction <add>, %93, %cst_36 [1] : vector<8x32xf32> to vector<8xf32>
    %95 = vector.shape_cast %94 : vector<8xf32> to vector<8x1xf32>
    %96 = tpu.transpose %95, [1, 0] : vector<8x1xf32> -> vector<1x8xf32>
    %97 = vector.broadcast %90 : vector<8x1xf32> to vector<8x8xf32>
    %98 = vector.broadcast %96 : vector<1x8xf32> to vector<8x8xf32>
    %99 = arith.addf %97, %98 : vector<8x8xf32>
    %cst_37 = arith.constant 0.000000e+00 : f32
    %100 = vector.broadcast %cst_37 : f32 to vector<8x8xf32>
    %101 = arith.cmpf ogt, %99, %100 : vector<8x8xf32>
    %cst_38 = arith.constant 2.000000e-01 : f32
    %102 = vector.broadcast %cst_38 : f32 to vector<8x8xf32>
    %103 = arith.mulf %102, %99 : vector<8x8xf32>
    %104 = arith.select %101, %99, %103 : vector<8x8xi1>, vector<8x8xf32>
    %cst_39 = arith.constant 0.000000e+00 : f32
    %105 = vector.broadcast %cst_39 : f32 to vector<8x8xf32>
    %106 = arith.cmpf ogt, %2, %105 : vector<8x8xf32>
    %cst_40 = arith.constant -1.000000e+30 : f32
    %107 = vector.broadcast %cst_40 : f32 to vector<8x8xf32>
    %108 = arith.select %106, %104, %107 : vector<8x8xi1>, vector<8x8xf32>
    %cst_41 = arith.constant dense<0xFF800000> : vector<8xf32>
    %109 = vector.multi_reduction <maximumf>, %108, %cst_41 [1] : vector<8x8xf32> to vector<8xf32>
    %110 = vector.shape_cast %109 : vector<8xf32> to vector<8x1xf32>
    %111 = vector.broadcast %110 : vector<8x1xf32> to vector<8x8xf32>
    %112 = arith.subf %108, %111 : vector<8x8xf32>
    %113 = math.exp %112 : vector<8x8xf32>
    %cst_42 = arith.constant dense<0.000000e+00> : vector<8xf32>
    %114 = vector.multi_reduction <add>, %113, %cst_42 [1] : vector<8x8xf32> to vector<8xf32>
    %115 = vector.shape_cast %114 : vector<8xf32> to vector<8x1xf32>
    %116 = vector.broadcast %115 : vector<8x1xf32> to vector<8x8xf32>
    %117 = arith.divf %113, %116 : vector<8x8xf32>
    %cst_43 = arith.constant dense<0.000000e+00> : vector<8x32xf32>
    %118 = tpu.matmul %117, %85, %cst_43 {dimension_numbers = #tpu.dot_dimension_numbers<[1], [0], [0], [1], [0, 0, 1, 1], [], []>} : vector<8x8xf32>, vector<8x32xf32>, vector<8x32xf32> -> vector<8x32xf32>
    %c246 = arith.constant 246 : index
    %c0_44 = arith.constant 0 : index
    %119 = vector.load %arg1[%c246, %c0_44] : memref<256x32xf32, #tpu.memory_space<vmem>>, vector<1x32xf32>
    %120 = vector.broadcast %119 : vector<1x32xf32> to vector<8x32xf32>
    %121 = arith.addf %118, %120 : vector<8x32xf32>
    %122 = vector.extract_strided_slice %83 {offsets = [0, 0], sizes = [8, 32], strides = [1, 1]} : vector<8x64xf32> to vector<8x32xf32>
    %123 = arith.addf %121, %122 : vector<8x32xf32>
    %c72 = arith.constant 72 : index
    %c0_45 = arith.constant 0 : index
    %124 = vector.load %arg1[%c72, %c0_45] : memref<256x32xf32, #tpu.memory_space<vmem>>, vector<32x32xf32>
    %cst_46 = arith.constant dense<0.000000e+00> : vector<8x32xf32>
    %125 = tpu.matmul %123, %124, %cst_46 {dimension_numbers = #tpu.dot_dimension_numbers<[1], [0], [0], [1], [0, 0, 1, 1], [], []>} : vector<8x32xf32>, vector<32x32xf32>, vector<8x32xf32> -> vector<8x32xf32>
    %c248 = arith.constant 248 : index
    %c0_47 = arith.constant 0 : index
    %126 = vector.load %arg1[%c248, %c0_47] : memref<256x32xf32, #tpu.memory_space<vmem>>, vector<1x32xf32>
    %127 = vector.broadcast %126 : vector<1x32xf32> to vector<8x32xf32>
    %128 = arith.mulf %125, %127 : vector<8x32xf32>
    %cst_48 = arith.constant dense<0.000000e+00> : vector<8xf32>
    %129 = vector.multi_reduction <add>, %128, %cst_48 [1] : vector<8x32xf32> to vector<8xf32>
    %130 = vector.shape_cast %129 : vector<8xf32> to vector<8x1xf32>
    %c247 = arith.constant 247 : index
    %c0_49 = arith.constant 0 : index
    %131 = vector.load %arg1[%c247, %c0_49] : memref<256x32xf32, #tpu.memory_space<vmem>>, vector<1x32xf32>
    %132 = vector.broadcast %131 : vector<1x32xf32> to vector<8x32xf32>
    %133 = arith.mulf %125, %132 : vector<8x32xf32>
    %cst_50 = arith.constant dense<0.000000e+00> : vector<8xf32>
    %134 = vector.multi_reduction <add>, %133, %cst_50 [1] : vector<8x32xf32> to vector<8xf32>
    %135 = vector.shape_cast %134 : vector<8xf32> to vector<8x1xf32>
    %136 = tpu.transpose %135, [1, 0] : vector<8x1xf32> -> vector<1x8xf32>
    %137 = vector.broadcast %130 : vector<8x1xf32> to vector<8x8xf32>
    %138 = vector.broadcast %136 : vector<1x8xf32> to vector<8x8xf32>
    %139 = arith.addf %137, %138 : vector<8x8xf32>
    %cst_51 = arith.constant 0.000000e+00 : f32
    %140 = vector.broadcast %cst_51 : f32 to vector<8x8xf32>
    %141 = arith.cmpf ogt, %139, %140 : vector<8x8xf32>
    %cst_52 = arith.constant 2.000000e-01 : f32
    %142 = vector.broadcast %cst_52 : f32 to vector<8x8xf32>
    %143 = arith.mulf %142, %139 : vector<8x8xf32>
    %144 = arith.select %141, %139, %143 : vector<8x8xi1>, vector<8x8xf32>
    %cst_53 = arith.constant 0.000000e+00 : f32
    %145 = vector.broadcast %cst_53 : f32 to vector<8x8xf32>
    %146 = arith.cmpf ogt, %2, %145 : vector<8x8xf32>
    %cst_54 = arith.constant -1.000000e+30 : f32
    %147 = vector.broadcast %cst_54 : f32 to vector<8x8xf32>
    %148 = arith.select %146, %144, %147 : vector<8x8xi1>, vector<8x8xf32>
    %cst_55 = arith.constant dense<0xFF800000> : vector<8xf32>
    %149 = vector.multi_reduction <maximumf>, %148, %cst_55 [1] : vector<8x8xf32> to vector<8xf32>
    %150 = vector.shape_cast %149 : vector<8xf32> to vector<8x1xf32>
    %151 = vector.broadcast %150 : vector<8x1xf32> to vector<8x8xf32>
    %152 = arith.subf %148, %151 : vector<8x8xf32>
    %153 = math.exp %152 : vector<8x8xf32>
    %cst_56 = arith.constant dense<0.000000e+00> : vector<8xf32>
    %154 = vector.multi_reduction <add>, %153, %cst_56 [1] : vector<8x8xf32> to vector<8xf32>
    %155 = vector.shape_cast %154 : vector<8xf32> to vector<8x1xf32>
    %156 = vector.broadcast %155 : vector<8x1xf32> to vector<8x8xf32>
    %157 = arith.divf %153, %156 : vector<8x8xf32>
    %cst_57 = arith.constant dense<0.000000e+00> : vector<8x32xf32>
    %158 = tpu.matmul %157, %125, %cst_57 {dimension_numbers = #tpu.dot_dimension_numbers<[1], [0], [0], [1], [0, 0, 1, 1], [], []>} : vector<8x8xf32>, vector<8x32xf32>, vector<8x32xf32> -> vector<8x32xf32>
    %c249 = arith.constant 249 : index
    %c0_58 = arith.constant 0 : index
    %159 = vector.load %arg1[%c249, %c0_58] : memref<256x32xf32, #tpu.memory_space<vmem>>, vector<1x32xf32>
    %160 = vector.broadcast %159 : vector<1x32xf32> to vector<8x32xf32>
    %161 = arith.addf %158, %160 : vector<8x32xf32>
    %162 = vector.extract_strided_slice %83 {offsets = [0, 32], sizes = [8, 32], strides = [1, 1]} : vector<8x64xf32> to vector<8x32xf32>
    %163 = arith.addf %161, %162 : vector<8x32xf32>
    %164 = tpu.concatenate %1, %42, %123, %163 in 1 : vector<8x8xf32>, vector<8x32xf32>, vector<8x32xf32>, vector<8x32xf32> -> vector<8x104xf32>
    %c104 = arith.constant 104 : index
    %c0_59 = arith.constant 0 : index
    %165 = vector.load %arg1[%c104, %c0_59] : memref<256x32xf32, #tpu.memory_space<vmem>>, vector<104x32xf32>
    %cst_60 = arith.constant dense<0.000000e+00> : vector<8x32xf32>
    %166 = tpu.matmul %164, %165, %cst_60 {dimension_numbers = #tpu.dot_dimension_numbers<[1], [0], [0], [1], [0, 0, 1, 1], [], []>} : vector<8x104xf32>, vector<104x32xf32>, vector<8x32xf32> -> vector<8x32xf32>
    %c250 = arith.constant 250 : index
    %c0_61 = arith.constant 0 : index
    %167 = vector.load %arg1[%c250, %c0_61] : memref<256x32xf32, #tpu.memory_space<vmem>>, vector<1x32xf32>
    %168 = vector.broadcast %167 : vector<1x32xf32> to vector<8x32xf32>
    %169 = arith.addf %166, %168 : vector<8x32xf32>
    %c251 = arith.constant 251 : index
    %c0_62 = arith.constant 0 : index
    %170 = vector.load %arg1[%c251, %c0_62] : memref<256x32xf32, #tpu.memory_space<vmem>>, vector<1x32xf32>
    %c252 = arith.constant 252 : index
    %c0_63 = arith.constant 0 : index
    %171 = vector.load %arg1[%c252, %c0_63] : memref<256x32xf32, #tpu.memory_space<vmem>>, vector<1x32xf32>
    %cst_64 = arith.constant dense<0.000000e+00> : vector<32xf32>
    %172 = vector.multi_reduction <add>, %169, %cst_64 [0] : vector<8x32xf32> to vector<32xf32>
    %173 = vector.shape_cast %172 : vector<32xf32> to vector<1x32xf32>
    %cst_65 = arith.constant 8.000000e+00 : f32
    %174 = vector.broadcast %cst_65 : f32 to vector<1x32xf32>
    %175 = arith.divf %173, %174 : vector<1x32xf32>
    %176 = vector.broadcast %175 : vector<1x32xf32> to vector<8x32xf32>
    %177 = arith.subf %169, %176 : vector<8x32xf32>
    %178 = vector.broadcast %175 : vector<1x32xf32> to vector<8x32xf32>
    %179 = arith.subf %169, %178 : vector<8x32xf32>
    %180 = arith.mulf %177, %179 : vector<8x32xf32>
    %cst_66 = arith.constant dense<0.000000e+00> : vector<32xf32>
    %181 = vector.multi_reduction <add>, %180, %cst_66 [0] : vector<8x32xf32> to vector<32xf32>
    %182 = vector.shape_cast %181 : vector<32xf32> to vector<1x32xf32>
    %cst_67 = arith.constant 8.000000e+00 : f32
    %183 = vector.broadcast %cst_67 : f32 to vector<1x32xf32>
    %184 = arith.divf %182, %183 : vector<1x32xf32>
    %185 = vector.broadcast %175 : vector<1x32xf32> to vector<8x32xf32>
    %186 = arith.subf %169, %185 : vector<8x32xf32>
    %cst_68 = arith.constant 9.99999974E-6 : f32
    %187 = vector.broadcast %cst_68 : f32 to vector<1x32xf32>
    %188 = arith.addf %184, %187 : vector<1x32xf32>
    %189 = math.rsqrt %188 : vector<1x32xf32>
    %190 = vector.broadcast %189 : vector<1x32xf32> to vector<8x32xf32>
    %191 = arith.mulf %186, %190 : vector<8x32xf32>
    %192 = vector.broadcast %170 : vector<1x32xf32> to vector<8x32xf32>
    %193 = arith.mulf %191, %192 : vector<8x32xf32>
    %194 = vector.broadcast %171 : vector<1x32xf32> to vector<8x32xf32>
    %195 = arith.addf %193, %194 : vector<8x32xf32>
    %cst_69 = arith.constant 0.000000e+00 : f32
    %196 = vector.broadcast %cst_69 : f32 to vector<8x32xf32>
    %197 = arith.maximumf %195, %196 : vector<8x32xf32>
    %c208 = arith.constant 208 : index
    %c0_70 = arith.constant 0 : index
    %198 = vector.load %arg1[%c208, %c0_70] : memref<256x32xf32, #tpu.memory_space<vmem>>, vector<32x32xf32>
    %cst_71 = arith.constant dense<0.000000e+00> : vector<8x32xf32>
    %199 = tpu.matmul %197, %198, %cst_71 {dimension_numbers = #tpu.dot_dimension_numbers<[1], [0], [0], [1], [0, 0, 1, 1], [], []>} : vector<8x32xf32>, vector<32x32xf32>, vector<8x32xf32> -> vector<8x32xf32>
    %c253 = arith.constant 253 : index
    %c0_72 = arith.constant 0 : index
    %200 = vector.load %arg1[%c253, %c0_72] : memref<256x32xf32, #tpu.memory_space<vmem>>, vector<1x32xf32>
    %201 = vector.broadcast %200 : vector<1x32xf32> to vector<8x32xf32>
    %202 = arith.addf %199, %201 : vector<8x32xf32>
    %c0_73 = arith.constant 0 : index
    %c0_74 = arith.constant 0 : index
    %203 = vector.load %arg3[%c0_73, %c0_74] : memref<8x32xf32, #tpu.memory_space<vmem>>, vector<8x32xf32>
    tpu.vector_store %arg3[%c0_73, %c0_74], %202 {strides = array<i32>} : memref<8x32xf32, #tpu.memory_space<vmem>>, vector<8x32xf32>,
    return
  }
}

</mosaic_0001>

<bundles_post_ra>
// kernel: tpu_custom_call.1
= control target key start
LH: loop header
LB: loop body
LE: loop exit
PB: predicated region body
PF: predicated region fallthrough
CT: control target
= control target key end

     0   :  { %vm19_vm0 = vcmask 64512   ;;  %s1003_s0 = inlined_call_operand.vmem [shape: f32[8,19], index: 0, kind: input, shape index: {}]   ;;  %s1004_s1 = inlined_call_operand.vmem [shape: f32[256,32], index: 1, kind: input, shape index: {}]   ;;  %s1005_s2 = inlined_call_operand.vmem [shape: f32[72,64], index: 2, kind: input, shape index: {}]   ;;  %s1006_s3 = inlined_call_operand.hbm [shape: f32[8,32], index: 3, kind: output, shape index: {}]  }
   0x1   :  { %v16_v0 = vld [vmem:[%s1004_s1] sm:$0xff] }
   0x2   :  { %v775_v1 = vld [vmem:[%s1003_s0] sm:$0xff]  ;;  %38 = vmatpush.msra.mxu0 %v16_v0 }
   0x3   :  { %652 = vmatmul.msk.f32.vlgmr.msra.gmra.mxu0 %vm19_vm0, %v775_v1 }
   0x4   :  { %8 = vsyncpa [#allocation3], 0  ;;  %v739_v2 = vmov 8.0   ;;  %v676_v4 = vld [vmem:[%s1004_s1 + $0xf0] ss:$0 sm:$0xff]  ;;  %vm45_vm1 = vcmask 261120  }
   0x5   :  { %695 = vrcp.f32 %v739_v2  ;;  %v91_v25 = vld [vmem:[%s1004_s1 + $0x20] sm:$0xff]  ;;  %v90_v26 = vld [vmem:[%s1004_s1 + $0x18] sm:$0xff]  ;;  %v89_v28 = vld [vmem:[%s1004_s1 + $0x10] sm:$0xff]  ;;  %s740_s16 = smov 8   ;;  %vm311_vm7 = vcmp.gt.f32.partialorder %v775_v1, 0.0  ;;  %vm317_vm8 = vcmask 130112  }
   0x6   :  { %109 = vmatpush.msra.mxu1 %v91_v25  ;;  %v88_v30 = vld [vmem:[%s1004_s1 + $0x8] sm:$0xff]  ;;  %v238_v33 = vld [vmem:[%s1004_s1 + $0x40] sm:$0xff]  ;;  %v237_v34 = vld [vmem:[%s1004_s1 + $0x38] sm:$0xff]  ;;  %vm129_vm9 = vcmask 517120   ;;  %s743_s20 = smov 120   ;;  %vm182_vm14 = vcmask 523264  }
   0x7   :  { %254 = vmatpush.msrb.mxu0 %v238_v33  ;;  %v236_v36 = vld [vmem:[%s1004_s1 + $0x30] sm:$0xff]  ;;  %v235_v51 = vld [vmem:[%s1004_s1 + $0x28] sm:$0xff]  ;;  %s744_s14 = smov 112   ;;  %vm211_vm15 = vcmask 1041408   ;;  %s745_s4 = smov 96  }
   0x8   :  { %110 = vmatpush.msra.mxu1 %v90_v26  ;;  %v677_v44 = vld [vmem:[%s1004_s1 + $0xf1] ss:$0 sm:$0xff]  ;;  %v678_v47 = vld [vmem:[%s1004_s1 + $0xf2] ss:$0 sm:$0xff]  ;;  %v679_v52 = vld [vmem:[%s1004_s1 + $0xf3] ss:$0 sm:$0xff] }
   0x9   :  { %255 = vmatpush.msrb.mxu0 %v237_v34  ;;  %v680_v55 = vld [vmem:[%s1004_s1 + $0xf4] ss:$0 sm:$0xff]  ;;  %v681_v59 = vld [vmem:[%s1004_s1 + $0xf5] ss:$0 sm:$0xff]  ;;  %s746_s5 = smov 40   ;;  %s747_s30 = smov 72  }
   0xa   :  { %111 = vmatpush.msra.mxu1 %v89_v28  ;;  %s748_s19 = smov [#allocation2]   ;;  %s643_s24 = sshll.u32 %s1006_s3, 4  ;;  %s644_s24 = int_to_ptr.hbm [resolvable:$true] %s643_s24 }
   0xb   :  { %v696_v3 = vpop.eup %695  ;;  %256 = vmatpush.msrb.mxu0 %v236_v36  ;;  %s641_s21 = sshll.u32 %s748_s19, 4  ;;  %s642_s21 = int_to_ptr.vmem [resolvable:$true] %s641_s21 }
   0xc   :  { %v54_v5 = vmul.f32 8.0, %v696_v3  ;;  %vm58_vm2 = vweird.f32 %v696_v3  ;;  %112 = vmatpush.msra.mxu1 %v88_v30 }
   0xd   :  { %257 = vmatpush.msrb.mxu0 %v235_v51 }
   0xe   :  { %v55_v8 = vsub.f32 1.0, %v54_v5 }
  0x10   :  { %v56_v11 = vmul.f32 %v696_v3, %v55_v8 }
  0x12   :  { %v57_v14 = vadd.f32 %v696_v3, %v56_v11 }
  0x14   :  { %v783_v17 = vsel %vm58_vm2, %v696_v3, %v57_v14  ;;  %vm208_vm2 = vcmask 15360  }
  0x80   :  { %v40_v6 = vpop.f32.mrf.mxu0 }
  0x81   :  { %v41_v7 = vadd.f32 %v676_v4, %v40_v6  ;;  %v741_v6 = vmov 18  }
  0x83   :  { %v46_v9 = vsel %vm45_vm1, %v41_v7, 0.0 }
  0x84   :  { %v47_v10 = vrot.slane %v46_v9, 4 }
  0x86   :  { %v48_v12 = vadd.f32 %v47_v10, %v46_v9  ;;  %v682_v10 = vld [vmem:[%s1005_s2] ss:$0 sm:$0xff] }
  0x88   :  { %v49_v13 = vrot.slane %v48_v12, 2 }
  0x8a   :  { %v50_v15 = vadd.f32 %v49_v13, %v48_v12  ;;  %v683_v12 = vld [vmem:[%s1005_s2 + $0x1] ss:$0 sm:$0xff] }
  0x8c   :  { %v51_v16 = vrot.slane %v50_v15, 1 }
  0x8e   :  { %v52_v18 = vadd.f32 %v51_v16, %v50_v15  ;;  %v742_v15 = vmov 2.0  }
  0x90   :  { %v60_v19 = vmul.f32 %v783_v17, %v52_v18 }
  0x92   :  { %v61_v20 = vsub.f32 %v41_v7, %v60_v19 }
  0x94   :  { %v62_v21 = vmul.f32 %v61_v20, %v61_v20 }
  0x96   :  { %v63_v22 = vsel %vm45_vm1, %v62_v21, 0.0 }
  0x97   :  { %v64_v23 = vrot.slane %v63_v22, 4 }
  0x99   :  { %v65_v24 = vadd.f32 %v64_v23, %v63_v22 }
  0x9b   :  { %v66_v27 = vrot.slane %v65_v24, 2 }
  0x9d   :  { %v67_v29 = vadd.f32 %v66_v27, %v65_v24 }
  0x9f   :  { %v68_v31 = vrot.slane %v67_v29, 1 }
  0xa1   :  { %v69_v32 = vadd.f32 %v68_v31, %v67_v29 }
  0xa3   :  { %v70_v35 = vmul.f32 %v69_v32, %v783_v17 }
  0xa5   :  { %v71_v37 = vadd.f32 1e-05, %v70_v35 }
  0xa7   :  { %697 = vrsqrt.f32 %v71_v37  ;;  %vm78_vm4 = vweird.f32 %v71_v37 }
  0xa8   :  { %699 = vrcp.f32 %v742_v15 }
  0xad   :  { %v698_v38 = vpop.eup %697 }
  0xae   :  { %v73_v39 = vmul.f32 %v698_v38, %v71_v37  ;;  %vm79_vm3 = vweird.f32 %v698_v38  ;;  %v700_v19 = vpop.eup %699 }
  0xaf   :  { %vm80_vm5 = vmor %vm78_vm4, %vm79_vm3  ;;  %v138_v21 = vmul.f32 2.0, %v700_v19  ;;  %vm142_vm10 = vweird.f32 %v700_v19 }
  0xb0   :  { %v74_v40 = vmul.f32 %v698_v38, %v73_v39 }
  0xb1   :  { %v139_v25 = vsub.f32 1.0, %v138_v21 }
  0xb2   :  { %v75_v41 = vmul.f32 0.5, %v74_v40 }
  0xb3   :  { %v140_v28 = vmul.f32 %v700_v19, %v139_v25  ;;  %v377_v25 = vld [vmem:[%s1004_s1 + $0x60] sm:$0xff] }
  0xb4   :  { %v76_v42 = vsub.f32 1.5, %v75_v41  ;;  %393 = vmatpush.msrb.mxu1 %v377_v25 }
  0xb5   :  { %v141_v30 = vadd.f32 %v700_v19, %v140_v28  ;;  %v375_v28 = vld [vmem:[%s1004_s1 + $0x50] sm:$0xff] }
  0xb6   :  { %v77_v43 = vmul.f32 %v698_v38, %v76_v42 }
  0xb7   :  { %v143_v33 = vsel %vm142_vm10, %v700_v19, %v141_v30  ;;  %v687_v30 = vld [vmem:[%s1004_s1 + $0xf6] ss:$0 sm:$0xff] }
  0xb8   :  { %v81_v45 = vsel %vm80_vm5, %v698_v38, %v77_v43 }
  0xb9   :  { %v82_v46 = vmul.f32 %v81_v45, %v61_v20 }
  0xbb   :  { %v84_v48 = vmul.f32 %v677_v44, %v82_v46 }
  0xbd   :  { %v86_v49 = vadd.f32 %v678_v47, %v84_v48 }
  0xbf   :  { %v87_v50 = vmax.f32 %v86_v49, 0.0 }
  0xc1   :  { %653 = vmatmul.msk.f32.vlgmr.msra.gmra.mxu1 %vm45_vm1, %v87_v50 }
 0x13e   :  { %v114_v53 = vpop.f32.mrf.mxu1 }
 0x13f   :  { %v822_v54 = vadd.f32 %v679_v52, %v114_v53 }
 0x141   :  { %657 = vmatmul.msk.f32.vlgmr.msrb.gmra.mxu0 %vm45_vm1, %v822_v54 }
 0x1be   :  { %v259_v56 = vpop.f32.mrf.mxu0 }
 0x1bf   :  { %368 = vmatpush.msra.mxu0 %v259_v56  ;;  %v270_v57 = vmul.f32 %v680_v55, %v259_v56  ;;  %v264_v60 = vmul.f32 %v681_v59, %v259_v56  ;;  %v179_v55 = vld [vmem:[%s1005_s2 + $0x40] sm:$0xff]  ;;  %v178_v56 = vld [vmem:[%s1005_s2 + $0x38] sm:$0xff]  ;;  %v176_v59 = vld [vmem:[%s1005_s2 + $0x28] sm:$0xff] }
 0x1c0   :  { %194 = vmatpush.msra.mxu2 %v179_v55 }
 0x1c1   :  { %v271_v58 = vsel %vm45_vm1, %v270_v57, 0.0  ;;  %v265_v61 = vsel %vm45_vm1, %v264_v60, 0.0  ;;  %v177_v57 = vld [vmem:[%s1005_s2 + $0x30] sm:$0xff] }
 0x1c2   :  { %272 = vadd.xlane.f32.xlu0 %v271_v58  ;;  %v684_v58 = vld [vmem:[%s1005_s2 + $0x2] ss:$0 sm:$0xff]  ;;  %195 = vmatpush.msra.mxu2 %v178_v56 }
 0x1c4   :  { %196 = vmatpush.msra.mxu2 %v177_v57 }
 0x1c6   :  { %197 = vmatpush.msra.mxu2 %v176_v59 }
 0x1ca   :  { %266 = vadd.xlane.f32.xlu0 %v265_v61  ;;  %v685_v61 = vld [vmem:[%s1005_s2 + $0x3] ss:$0 sm:$0xff] }
 0x235   :  { %v273_v62 = vpop.xlane.xlu0 %272 }
 0x236   :  { %274 = vxpose.xlu1.b32.start.end [1/1] (short) (narrow) %v273_v62, 8  ;;  %v175_v62 = vld [vmem:[%s1005_s2 + $0x20] sm:$0xff] }
 0x237   :  { %198 = vmatpush.msra.mxu2 %v175_v62 }
 0x23d   :  { %v267_v2 = vpop.xlane.xlu0 %266 }
 0x289   :  { %674 = vset.pattern.permute.xlu1 %v741_v6 }
 0x290   :  { %119 = vperm.xlu1 %674, %v775_v1  }
 0x2da   :  { %v290_v63 = vpop.trf.xlu1 }
 0x2db   :  { %v306_v0 = vperm.slane %v290_v63, 0  ;;  %v174_v63 = vld [vmem:[%s1005_s2 + $0x18] sm:$0xff] }
 0x2dc   :  { %199 = vmatpush.msra.mxu2 %v174_v63 }
 0x2dd   :  { %v307_v3 = vadd.f32 %v306_v0, %v267_v2  ;;  %v173_v2 = vld [vmem:[%s1005_s2 + $0x10] sm:$0xff] }
 0x2de   :  { %200 = vmatpush.msra.mxu2 %v173_v2 }
 0x2df   :  { %vm308_vm6 = vcmp.gt.f32.partialorder %v307_v3, 0.0  ;;  %v309_v4 = vmul.f32 0.2, %v307_v3 }
 0x2e1   :  { %v310_v5 = vsel %vm308_vm6, %v307_v3, %v309_v4  ;;  %v172_v3 = vld [vmem:[%s1005_s2 + $0x8] sm:$0xff] }
 0x2e2   :  { %313 = vrot.lane.b32.xlu2 %v310_v5, %s740_s16  ;;  %201 = vmatpush.msra.mxu2 %v172_v3 }
 0x302   :  { %v120_v11 = vpop.permute.xlu1 %119 }
 0x303   :  { %v123_v13 = vmul.f32 %v682_v10, %v120_v11 }
 0x305   :  { %v126_v14 = vadd.f32 %v683_v12, %v123_v13 }
 0x307   :  { %v130_v16 = vsel %vm129_vm9, %v126_v14, 0.0 }
 0x308   :  { %v131_v18 = vrot.slane %v130_v16, 4 }
 0x30a   :  { %v132_v20 = vadd.f32 %v131_v18, %v130_v16 }
 0x30c   :  { %v133_v24 = vrot.slane %v132_v20, 2 }
 0x30e   :  { %v134_v27 = vadd.f32 %v133_v24, %v132_v20 }
 0x310   :  { %v135_v29 = vrot.slane %v134_v27, 1 }
 0x312   :  { %v136_v32 = vadd.f32 %v135_v29, %v134_v27  ;;  %v374_v29 = vld [vmem:[%s1004_s1 + $0x48] sm:$0xff] }
 0x314   :  { %v144_v34 = vmul.f32 %v143_v33, %v136_v32 }
 0x316   :  { %v145_v35 = vsub.f32 %v126_v14, %v144_v34 }
 0x318   :  { %v146_v36 = vmul.f32 %v145_v35, %v145_v35 }
 0x31a   :  { %v147_v37 = vsel %vm129_vm9, %v146_v36, 0.0  ;;  %v689_v36 = vld [vmem:[%s1004_s1 + $0xf8] ss:$0 sm:$0xff] }
 0x31b   :  { %v148_v38 = vrot.slane %v147_v37, 4 }
 0x31d   :  { %v149_v39 = vadd.f32 %v148_v38, %v147_v37 }
 0x31f   :  { %v150_v40 = vrot.slane %v149_v39, 2 }
 0x321   :  { %v151_v41 = vadd.f32 %v150_v40, %v149_v39 }
 0x323   :  { %v152_v42 = vrot.slane %v151_v41, 1 }
 0x325   :  { %v153_v43 = vadd.f32 %v152_v42, %v151_v41 }
 0x327   :  { %v154_v44 = vmul.f32 %v153_v43, %v143_v33 }
 0x329   :  { %v155_v45 = vadd.f32 1e-05, %v154_v44 }
 0x32b   :  { %vm162_vm11 = vweird.f32 %v155_v45 }
 0x33c   :  { %v314_v7 = vpop.permute.xlu2 %313 }
 0x33d   :  { %v316_v8 = vsel %vm311_vm7, %v314_v7, -1e+30 }
 0x33e   :  { %v318_v9 = vsel %vm317_vm8, %v316_v8, -inf }
 0x33f   :  { %319 = vmax.xlane.f32.xlu2 %v318_v9 }
 0x357   :  { %206 = vrot.lane.b32.xlu2 %v775_v1, %s744_s14 }
 0x3b2   :  { %v320_v22 = vpop.xlane.xlu2 %319 }
 0x3b3   :  { %v321_v23 = vsub.f32 %v316_v8, %v320_v22  ;;  %v686_v8 = vld [vmem:[%s1005_s2 + $0x4] ss:$0 sm:$0xff] }
 0x3b5   :  { %v322_v26 = vmul.f32 1.442695, %v321_v23 }
 0x3b7   :  { %701 = vpow2.f32 %v322_v26  ;;  %v376_v26 = vld [vmem:[%s1004_s1 + $0x58] sm:$0xff] }
 0x3b8   :  { %703 = vrsqrt.f32 %v155_v45  ;;  %394 = vmatpush.msrb.mxu1 %v376_v26  ;;  %v530_v26 = vld [vmem:[%s1004_s1 + $0x68] sm:$0xff] }
 0x3ba   :  { %v207_v12 = vpop.permute.xlu2 %206  ;;  %395 = vmatpush.msrb.mxu1 %v375_v28 }
 0x3bc   :  { %396 = vmatpush.msrb.mxu1 %v374_v29 }
 0x3bd   :  { %v848_v31 = vpop.eup %701 }
 0x3be   :  { %325 = vrot.lane.b32.xlu0 %v848_v31, %s743_s20  ;;  %v704_v46 = vpop.eup %703 }
 0x3bf   :  { %v157_v47 = vmul.f32 %v704_v46, %v155_v45  ;;  %vm163_vm12 = vweird.f32 %v704_v46 }
 0x3c0   :  { %vm164_vm13 = vmor %vm162_vm11, %vm163_vm12  ;;  %vm526_vm12 = vcmask 326656  }
 0x3c1   :  { %v158_v48 = vmul.f32 %v704_v46, %v157_v47 }
 0x3c3   :  { %v159_v49 = vmul.f32 0.5, %v158_v48 }
 0x3c5   :  { %v160_v50 = vsub.f32 1.5, %v159_v49 }
 0x3c7   :  { %v161_v51 = vmul.f32 %v704_v46, %v160_v50 }
 0x3c9   :  { %v165_v52 = vsel %vm164_vm13, %v704_v46, %v161_v51  ;;  %vm528_vm13 = vcmask 588800  }
 0x3ca   :  { %v166_v53 = vmul.f32 %v165_v52, %v145_v35  ;;  %v688_v35 = vld [vmem:[%s1004_s1 + $0xf7] ss:$0 sm:$0xff] }
 0x3cc   :  { %v168_v60 = vmul.f32 %v684_v58, %v166_v53 }
 0x3ce   :  { %v170_v0 = vadd.f32 %v685_v61, %v168_v60 }
 0x3d0   :  { %v171_v4 = vmax.f32 %v170_v0, 0.0 }
 0x3d2   :  { %654 = vmatmul.msk.f32.vlgmr.msra.gmra.mxu2 %vm182_vm14, %v171_v4  ;;  %vm545_vm14 = vcmask 850944  }
 0x430   :  { %v326_v5 = vpop.permute.xlu0 %325 }
 0x431   :  { %v328_v7 = vsel %vm19_vm0, %v326_v5, 0.0 }
 0x432   :  { %329 = vadd.xlane.f32.xlu0 %v328_v7 }
 0x455   :  { %v203_v10 = vpop.f32.mrf.mxu2 }
 0x456   :  { %v204_v11 = vadd.f32 %v686_v8, %v203_v10  ;;  %v541_v10 = vld [vmem:[%s1004_s1 + $0xc0] sm:$0xff] }
 0x458   :  { %655 = vmatpush.msk.msrb.mxu2 %vm211_vm15, %v204_v11  ;;  %v540_v11 = vld [vmem:[%s1004_s1 + $0xb8] sm:$0xff] }
 0x459   :  { %656 = vmatmul.msk.f32.vlgmr.msrb.gmra.mxu2 %vm208_vm2, %v207_v12  ;;  %v538_v12 = vld [vmem:[%s1004_s1 + $0xa8] sm:$0xff] }
 0x4a5   :  { %v330_v9 = vpop.xlane.xlu0 %329 }
 0x4a6   :  { %705 = vrcp.f32 %v330_v9  ;;  %v342_v16 = vand.u32 2147483648, %v330_v9  ;;  %v340_v19 = vand.u32 2147483647, %v330_v9  ;;  %vm336_vm4 = vweird.f32 %v330_v9 }
 0x4a8   :  { %v343_v21 = vor.u32 1.1754944e-38, %v342_v16  ;;  %vm341_vm6 = vcmp.eq.f32.partialorder %v340_v19, 8.507059e+37  ;;  %v534_v16 = vld [vmem:[%s1004_s1 + $0x88] sm:$0xff]  ;;  %v532_v19 = vld [vmem:[%s1004_s1 + $0x78] sm:$0xff] }
 0x4ac   :  { %v706_v13 = vpop.eup %705 }
 0x4ad   :  { %v332_v14 = vmul.f32 %v706_v13, %v330_v9  ;;  %vm337_vm3 = vweird.f32 %v706_v13  ;;  %v542_v9 = vld [vmem:[%s1004_s1 + $0xc8] sm:$0xff] }
 0x4ae   :  { %vm338_vm5 = vmor %vm336_vm4, %vm337_vm3  ;;  %552 = vmatpush.msra.mxu3 %v542_v9 }
 0x4af   :  { %v333_v15 = vsub.f32 1.0, %v332_v14  ;;  %v536_v14 = vld [vmem:[%s1004_s1 + $0x98] sm:$0xff] }
 0x4b0   :  { %553 = vmatpush.msra.mxu3 %v541_v10 }
 0x4b1   :  { %v334_v18 = vmul.f32 %v706_v13, %v333_v15  ;;  %v535_v15 = vld [vmem:[%s1004_s1 + $0x90] sm:$0xff] }
 0x4b2   :  { %554 = vmatpush.msra.mxu3 %v540_v11 }
 0x4b3   :  { %v335_v20 = vadd.f32 %v706_v13, %v334_v18  ;;  %v533_v18 = vld [vmem:[%s1004_s1 + $0x80] sm:$0xff] }
 0x4b5   :  { %v339_v22 = vsel %vm338_vm5, %v706_v13, %v335_v20  ;;  %v537_v13 = vld [vmem:[%s1004_s1 + $0xa0] sm:$0xff]  ;;  %v531_v20 = vld [vmem:[%s1004_s1 + $0x70] sm:$0xff] }
 0x4b6   :  { %v344_v23 = vsel %vm341_vm6, %v343_v21, %v339_v22  ;;  %v690_v21 = vld [vmem:[%s1004_s1 + $0xf9] ss:$0 sm:$0xff] }
 0x4b7   :  { %v345_v24 = vmul.f32 %v848_v31, %v344_v23 }
 0x4b9   :  { %349 = vrot.lane.b32.xlu2 %v345_v24, %s743_s20 }
 0x4dc   :  { %v232_v33 = vpop.f32.mrf.mxu2 }
 0x513   :  { %v350_v27 = vpop.permute.xlu2 %349 }
 0x514   :  { %658 = vmatmul.msk.f32.vlgmr.msra.gmra.mxu0 %vm19_vm0, %v350_v27 }
 0x591   :  { %v370_v31 = vpop.f32.mrf.mxu0 }
 0x592   :  { %v371_v32 = vadd.f32 %v687_v30, %v370_v31 }
 0x594   :  { %v373_v34 = vadd.f32 %v371_v32, %v232_v33 }
 0x596   :  { %659 = vmatmul.msk.f32.vlgmr.msrb.gmra.mxu1 %vm45_vm1, %v373_v34 }
 0x613   :  { %v398_v37 = vpop.f32.mrf.mxu1 }
 0x614   :  { %505 = vmatpush.msrb.mxu0 %v398_v37  ;;  %v409_v38 = vmul.f32 %v688_v35, %v398_v37  ;;  %v403_v39 = vmul.f32 %v689_v36, %v398_v37 }
 0x616   :  { %v410_v40 = vsel %vm45_vm1, %v409_v38, 0.0  ;;  %v404_v41 = vsel %vm45_vm1, %v403_v39, 0.0 }
 0x617   :  { %411 = vadd.xlane.f32.xlu0 %v410_v40  ;;  %405 = vadd.xlane.f32.xlu2 %v404_v41 }
 0x68a   :  { %v412_v42 = vpop.xlane.xlu0 %411  ;;  %v406_v45 = vpop.xlane.xlu2 %405 }
 0x68b   :  { %413 = vxpose.xlu0.b32.start.end [1/1] (short) (narrow) %v412_v42, 8 }
 0x6f2   :  { %675 = vset.pattern.permute.xlu0 %v741_v6 }
 0x72f   :  { %v429_v43 = vpop.trf.xlu0 }
 0x730   :  { %v445_v44 = vperm.slane %v429_v43, 0 }
 0x732   :  { %v446_v46 = vadd.f32 %v445_v44, %v406_v45 }
 0x734   :  { %vm447_vm9 = vcmp.gt.f32.partialorder %v446_v46, 0.0  ;;  %v448_v47 = vmul.f32 0.2, %v446_v46 }
 0x736   :  { %v449_v48 = vsel %vm447_vm9, %v446_v46, %v448_v47 }
 0x737   :  { %451 = vrot.lane.b32.xlu1 %v449_v48, %s740_s16  ;;  %v609_v48 = vld [vmem:[%s1004_s1 + $0xe8] sm:$0xff] }
 0x738   :  { %627 = vmatpush.msra.mxu1 %v609_v48 }
 0x7a9   :  { %v452_v49 = vpop.permute.xlu1 %451 }
 0x7aa   :  { %v454_v50 = vsel %vm311_vm7, %v452_v49, -1e+30 }
 0x7ab   :  { %v455_v51 = vsel %vm317_vm8, %v454_v50, -inf }
 0x7ac   :  { %456 = vmax.xlane.f32.xlu1 %v455_v51 }
 0x7c5   :  { %511 = vrot.lane.b32.xlu1 %v232_v33, %s745_s4  ;;  %v691_v33 = vld [vmem:[%s1004_s1 + $0xfa] ss:$0 sm:$0xff] }
 0x81f   :  { %v457_v52 = vpop.xlane.xlu1 %456 }
 0x820   :  { %v458_v6 = vsub.f32 %v454_v50, %v457_v52  ;;  %v608_v50 = vld [vmem:[%s1004_s1 + $0xe0] sm:$0xff]  ;;  %v607_v52 = vld [vmem:[%s1004_s1 + $0xd8] sm:$0xff] }
 0x821   :  { %628 = vmatpush.msra.mxu1 %v608_v50 }
 0x822   :  { %v459_v53 = vmul.f32 1.442695, %v458_v6 }
 0x823   :  { %629 = vmatpush.msra.mxu1 %v607_v52 }
 0x824   :  { %707 = vpow2.f32 %v459_v53  ;;  %v606_v53 = vld [vmem:[%s1004_s1 + $0xd0] sm:$0xff] }
 0x825   :  { %630 = vmatpush.msra.mxu1 %v606_v53 }
 0x82a   :  { %v708_v55 = vpop.eup %707 }
 0x82b   :  { %462 = vrot.lane.b32.xlu2 %v708_v55, %s743_s20 }
 0x837   :  { %v512_v24 = vpop.permute.xlu1 %511 }
 0x885   :  { %v463_v56 = vpop.permute.xlu2 %462 }
 0x886   :  { %v465_v57 = vsel %vm19_vm0, %v463_v56, 0.0 }
 0x887   :  { %466 = vadd.xlane.f32.xlu0 %v465_v57 }
 0x8fa   :  { %v467_v58 = vpop.xlane.xlu0 %466 }
 0x8fb   :  { %709 = vrcp.f32 %v467_v58  ;;  %v479_v62 = vand.u32 2147483648, %v467_v58  ;;  %v477_v0 = vand.u32 2147483647, %v467_v58  ;;  %vm473_vm8 = vweird.f32 %v467_v58 }
 0x8fd   :  { %v480_v3 = vor.u32 1.1754944e-38, %v479_v62  ;;  %vm478_vm11 = vcmp.eq.f32.partialorder %v477_v0, 8.507059e+37  ;;  %v692_v0 = vld [vmem:[%s1004_s1 + $0xfb] ss:$0 sm:$0xff] }
 0x901   :  { %v710_v59 = vpop.eup %709 }
 0x902   :  { %v469_v60 = vmul.f32 %v710_v59, %v467_v58  ;;  %vm474_vm7 = vweird.f32 %v710_v59 }
 0x903   :  { %vm475_vm10 = vmor %vm473_vm8, %vm474_vm7 }
 0x904   :  { %v470_v61 = vsub.f32 1.0, %v469_v60 }
 0x906   :  { %v471_v63 = vmul.f32 %v710_v59, %v470_v61 }
 0x908   :  { %v472_v2 = vadd.f32 %v710_v59, %v471_v63 }
 0x90a   :  { %v476_v4 = vsel %vm475_vm10, %v710_v59, %v472_v2 }
 0x90b   :  { %v481_v5 = vsel %vm478_vm11, %v480_v3, %v476_v4 }
 0x90c   :  { %v482_v7 = vmul.f32 %v708_v55, %v481_v5 }
 0x90e   :  { %486 = vrot.lane.b32.xlu2 %v482_v7, %s743_s20 }
 0x916   :  { %515 = vrot.lane.b32.xlu2 %v822_v54, %s740_s16  ;;  %v539_v54 = vld [vmem:[%s1004_s1 + $0xb0] sm:$0xff] }
 0x917   :  { %555 = vmatpush.msra.mxu3 %v539_v54 }
 0x919   :  { %556 = vmatpush.msra.mxu3 %v538_v12 }
 0x91b   :  { %557 = vmatpush.msra.mxu3 %v537_v13 }
 0x91d   :  { %558 = vmatpush.msra.mxu3 %v536_v14 }
 0x91e   :  { %518 = vrot.lane.b32.xlu2 %v373_v34, %s746_s5 }
 0x91f   :  { %559 = vmatpush.msra.mxu3 %v535_v15 }
 0x921   :  { %560 = vmatpush.msra.mxu3 %v534_v16 }
 0x923   :  { %561 = vmatpush.msra.mxu3 %v533_v18 }
 0x925   :  { %562 = vmatpush.msra.mxu3 %v532_v19 }
 0x927   :  { %563 = vmatpush.msra.mxu3 %v531_v20 }
 0x929   :  { %564 = vmatpush.msra.mxu3 %v530_v26 }
 0x968   :  { %v487_v8 = vpop.permute.xlu2 %486 }
 0x969   :  { %660 = vmatmul.msk.f32.vlgmr.msrb.gmra.mxu0 %vm19_vm0, %v487_v8  ;;  %v694_v8 = vld [vmem:[%s1004_s1 + $0xfd] ss:$0 sm:$0xff] }
 0x970   :  { %v516_v27 = vpop.permute.xlu2 %515 }
 0x971   :  { %v525_v29 = vsel %vm19_vm0, %v775_v1, %v516_v27 }
 0x978   :  { %v519_v28 = vpop.permute.xlu2 %518 }
 0x979   :  { %v527_v30 = vsel %vm526_vm12, %v525_v29, %v519_v28 }
 0x9e6   :  { %v507_v22 = vpop.f32.mrf.mxu0 }
 0x9e7   :  { %v508_v23 = vadd.f32 %v690_v21, %v507_v22 }
 0x9e9   :  { %v514_v25 = vadd.f32 %v512_v24, %v508_v23 }
 0x9eb   :  { %522 = vrot.lane.b32.xlu2 %v514_v25, %s747_s30 }
 0xa45   :  { %v523_v31 = vpop.permute.xlu2 %522 }
 0xa46   :  { %v529_v32 = vsel %vm528_vm13, %v527_v30, %v523_v31 }
 0xa47   :  { %661 = vmatmul.msk.f32.vlgmr.msra.gmra.mxu3 %vm545_vm14, %v529_v32 }
 0xaca   :  { %v566_v34 = vpop.f32.mrf.mxu3 }
 0xacb   :  { %v567_v35 = vadd.f32 %v691_v33, %v566_v34 }
 0xacd   :  { %v571_v36 = vsel %vm45_vm1, %v567_v35, 0.0 }
 0xace   :  { %v572_v37 = vrot.slane %v571_v36, 4 }
 0xad0   :  { %v573_v38 = vadd.f32 %v572_v37, %v571_v36 }
 0xad2   :  { %v574_v39 = vrot.slane %v573_v38, 2 }
 0xad4   :  { %v575_v40 = vadd.f32 %v574_v39, %v573_v38 }
 0xad6   :  { %v576_v41 = vrot.slane %v575_v40, 1 }
 0xad8   :  { %v577_v42 = vadd.f32 %v576_v41, %v575_v40 }
 0xada   :  { %v578_v1 = vmul.f32 %v577_v42, %v783_v17 }
 0xadc   :  { %v579_v43 = vsub.f32 %v567_v35, %v578_v1 }
 0xade   :  { %v580_v44 = vmul.f32 %v579_v43, %v579_v43 }
 0xae0   :  { %v581_v45 = vsel %vm45_vm1, %v580_v44, 0.0 }
 0xae1   :  { %v582_v46 = vrot.slane %v581_v45, 4 }
 0xae3   :  { %v583_v47 = vadd.f32 %v582_v46, %v581_v45 }
 0xae5   :  { %v584_v49 = vrot.slane %v583_v47, 2 }
 0xae7   :  { %v585_v51 = vadd.f32 %v584_v49, %v583_v47 }
 0xae9   :  { %v586_v6 = vrot.slane %v585_v51, 1 }
 0xaeb   :  { %v587_v55 = vadd.f32 %v586_v6, %v585_v51 }
 0xaed   :  { %v588_v56 = vmul.f32 %v587_v55, %v783_v17  ;;  %v693_v17 = vld [vmem:[%s1004_s1 + $0xfc] ss:$0 sm:$0xff] }
 0xaef   :  { %v589_v57 = vadd.f32 1e-05, %v588_v56 }
 0xaf1   :  { %711 = vrsqrt.f32 %v589_v57  ;;  %vm596_vm15 = vweird.f32 %v589_v57 }
 0xaf7   :  { %v712_v58 = vpop.eup %711 }
 0xaf8   :  { %v591_v59 = vmul.f32 %v712_v58, %v589_v57  ;;  %vm597_vm0 = vweird.f32 %v712_v58 }
 0xaf9   :  { %vm598_vm2 = vmor %vm596_vm15, %vm597_vm0 }
 0xafa   :  { %v592_v60 = vmul.f32 %v712_v58, %v591_v59 }
 0xafc   :  { %v593_v61 = vmul.f32 0.5, %v592_v60 }
 0xafe   :  { %v594_v62 = vsub.f32 1.5, %v593_v61 }
 0xb00   :  { %v595_v63 = vmul.f32 %v712_v58, %v594_v62 }
 0xb02   :  { %v599_v2 = vsel %vm598_vm2, %v712_v58, %v595_v63 }
 0xb03   :  { %v600_v3 = vmul.f32 %v599_v2, %v579_v43 }
 0xb05   :  { %v602_v4 = vmul.f32 %v692_v0, %v600_v3 }
 0xb07   :  { %v604_v5 = vadd.f32 %v693_v17, %v602_v4 }
 0xb09   :  { %v605_v7 = vmax.f32 %v604_v5, 0.0 }
 0xb0b   :  { %662 = vmatmul.msk.f32.vlgmr.msra.gmra.mxu1 %vm45_vm1, %v605_v7 }
 0xb88   :  { %v632_v9 = vpop.f32.mrf.mxu1 }
 0xb89   :  { %v633_v10 = vadd.f32 %v694_v8, %v632_v9 }
 0xb8b   :  { %635 = vst.msk [vmem:[#allocation2] sm:$0xff] %vm45_vm1, %v633_v10 }
 0xb8c   :  { %646 = dma.vmem_to_hbm [thread:$0]  %s642_s21, 128, %s644_s24, [#allocation3]  }
 0xb8d   :  { %737 = dma.done.wait [#allocation3], 128  }
 0xb8e   :  { %738 = vsyncadd [#allocation3], 4294967168 }
 0xb8f   :  { %651 = vsyncpa [#allocation3], 1 }

</bundles_post_ra>
